<compile_context>
chip_gen: v6e
topology: v6e:2x2x1
jax: 0.10.0
libtpu: 0.0.40
codegen_flags: <defaults>
</compile_context>

<pallas_src>
import functools

import jax
import jax.numpy as jnp
from jax.experimental import pallas as pl
from jax.experimental.pallas import tpu as pltpu

EPS = 1e-5


def _round_up(a, b):
    return ((a + b - 1) // b) * b


def _vmem_limit_bytes():
    # Generation-aware scoped-VMEM cap: ~75% of physical per-TC VMEM
    # (v5e/v6e: 128 MiB -> 96 MiB, v7x: 64 MiB -> 48 MiB).  Falls back to a
    # v7x-safe value if the query is unavailable.
    try:
        cap = int(pltpu.get_tpu_info().vmem_capacity_bytes)
    except Exception:
        cap = 64 * 1024 * 1024
    return max(32 * 1024 * 1024, min((cap * 3) // 4, 110 * 1024 * 1024))


# ----------------------------------------------------------------------------
# in_proj: depthwise Conv2d(k=stride, s=stride, groups=C, bias=False) + BN
# ----------------------------------------------------------------------------
def _in_proj_kernel(x_ref, w_ref, scale_ref, bias_ref, o_ref, *, s2, C):
    # x_ref: (TM, s2*C) lane-dense, w_ref: (1, s2*C), scale/bias: (1, C)
    prod = x_ref[...] * w_ref[...]                      # full-width VPU multiply
    acc = prod[:, 0:C]
    for k in range(1, s2):                              # segment reduce over s*s taps
        acc = acc + prod[:, k * C:(k + 1) * C]
    o_ref[...] = (acc * scale_ref[...] + bias_ref[...]).astype(o_ref.dtype)


def in_proj_forward(x_nhwc, w_dw, scale, bias, stride):
    N, H, W, C = x_nhwc.shape
    s = stride
    assert H % s == 0 and W % s == 0
    Ho, Wo = H // s, W // s
    s2 = s * s
    M = N * Ho * Wo
    # space-to-depth, then flatten taps into the lane axis: (M, s2*C) is 128 lanes
    # for the common (s=2, C=32) case -> full-width vector loads.
    xs = (x_nhwc.reshape(N, Ho, s, Wo, s, C)
          .transpose(0, 1, 3, 2, 4, 5)
          .reshape(M, s2 * C))
    tm = min(512, _round_up(M, 8))
    mp = _round_up(M, tm)
    if mp != M:
        xs = jnp.pad(xs, ((0, mp - M), (0, 0)))
    out = pl.pallas_call(
        functools.partial(_in_proj_kernel, s2=s2, C=C),
        out_shape=jax.ShapeDtypeStruct((mp, C), jnp.float32),
        grid=(mp // tm,),
        in_specs=[
            pl.BlockSpec((tm, s2 * C), lambda i: (i, 0)),
            pl.BlockSpec((1, s2 * C), lambda i: (0, 0)),
            pl.BlockSpec((1, C), lambda i: (0, 0)),
            pl.BlockSpec((1, C), lambda i: (0, 0)),
        ],
        out_specs=pl.BlockSpec((tm, C), lambda i: (i, 0)),
        compiler_params=pltpu.CompilerParams(
            dimension_semantics=("parallel",),
            vmem_limit_bytes=_vmem_limit_bytes()),
    )(xs, w_dw.reshape(1, s2 * C), scale.reshape(1, -1), bias.reshape(1, -1))
    return out[:M].reshape(N, Ho, Wo, C)


# ----------------------------------------------------------------------------
# Fused: all 3x3 layers + concat + out_proj (2 x 1x1) + optional residual
# ----------------------------------------------------------------------------
def _hg_fused_kernel(x0_hbm, *refs, TH, Ho, Wo, C0, Ch, L, identity, prefetch):
    layer_refs = refs[:3 * L]
    w1_ref, s1_ref, b1_ref, w2_ref, s2_ref, b2_ref = refs[3 * L:3 * L + 6]
    o_ref = refs[3 * L + 6]
    x0_buf = refs[3 * L + 7]      # (2, TH+2L, Wo+2L, C0) double-buffered halo window
    sem = refs[3 * L + 8]         # DMA((2,))

    n = pl.program_id(0)
    t = pl.program_id(1)
    T = pl.num_programs(1)
    row0 = t * TH                 # first output row of this tile (image coords)
    slot = t % 2

    def issue(tt, s_):
        # halo'd window of the pre-padded in_proj activation (HBM -> VMEM)
        pltpu.make_async_copy(
            x0_hbm.at[pl.ds(n, 1), pl.ds(tt * TH, TH + 2 * L), :, :],
            x0_buf.at[pl.ds(s_, 1)],
            sem.at[s_]).start()

    if prefetch:
        # Double-buffered halo DMA across the sequential ("arbitrary") row-tile
        # axis: fetch tile 0 once per image, then prefetch tile t+1 while
        # computing tile t so the HBM latency is hidden behind compute.
        @pl.when(t == 0)
        def _():
            issue(t, slot)

        @pl.when(t + 1 < T)
        def _():
            issue(t + 1, 1 - slot)
    else:
        issue(t, slot)

    pltpu.make_async_copy(
        x0_hbm.at[pl.ds(n, 1), pl.ds(t * TH, TH + 2 * L), :, :],
        x0_buf.at[pl.ds(slot, 1)],
        sem.at[slot]).wait()

    x0_f32 = x0_buf[slot]                               # (TH+2L, Wo+2L, C0) f32
    cur = x0_f32.astype(jnp.bfloat16)                   # bf16 feeds the MXU

    # out_proj stage-1 accumulated per concat group (no materialized concat)
    crop0 = cur[L:L + TH, L:L + Wo, :].reshape(TH * Wo, C0)
    acc1 = jnp.dot(crop0, w1_ref[0:C0, :], preferred_element_type=jnp.float32)

    for l in range(1, L + 1):
        w_ref = layer_refs[3 * (l - 1)]
        sc_ref = layer_refs[3 * (l - 1) + 1]
        bi_ref = layer_refs[3 * (l - 1) + 2]
        e = L - l                                       # halo extent of layer output
        cin = C0 if l == 1 else Ch
        hout, wout = TH + 2 * e, Wo + 2 * e
        # 3x3 conv as 9 accumulated K=cin MXU matmuls: no lane-axis im2col concat
        # and no (hout*wout, 9*cin) VMEM temporary.
        acc = None
        for kh in range(3):
            for kw in range(3):
                tap = cur[kh:kh + hout, kw:kw + wout, :].reshape(hout * wout, cin)
                wk = w_ref[(kh * 3 + kw) * cin:(kh * 3 + kw + 1) * cin, :]
                d = jnp.dot(tap, wk, preferred_element_type=jnp.float32)
                acc = d if acc is None else acc + d
        y = jnp.maximum(acc * sc_ref[...] + bi_ref[...], 0.0)      # BN + ReLU (f32)
        y = y.reshape(hout, wout, Ch)
        if e > 0:
            # Out-of-image halo positions must be exactly 0 so they behave as the
            # next conv's zero padding (conv+BN+ReLU of zeros is not zero).
            rows = jax.lax.broadcasted_iota(jnp.int32, (hout, wout), 0)
            cols = jax.lax.broadcasted_iota(jnp.int32, (hout, wout), 1)
            g = rows + (row0 - e)
            ok = jnp.logical_and(
                jnp.logical_and(g >= 0, g < Ho),
                jnp.logical_and(cols >= e, cols < e + Wo))
            y = jnp.where(ok[:, :, None], y, 0.0)
        cur = y.astype(jnp.bfloat16)
        crop = cur[e:e + TH, e:e + Wo, :].reshape(TH * Wo, Ch)
        off = C0 + (l - 1) * Ch
        acc1 = acc1 + jnp.dot(crop, w1_ref[off:off + Ch, :],
                              preferred_element_type=jnp.float32)

    y1 = jnp.maximum(acc1 * s1_ref[...] + b1_ref[...], 0.0)        # out_proj[0]
    y2 = jnp.dot(y1.astype(jnp.bfloat16), w2_ref[...],
                 preferred_element_type=jnp.float32)
    y2 = jnp.maximum(y2 * s2_ref[...] + b2_ref[...], 0.0)          # out_proj[1]
    if identity:
        # residual uses the f32 in_proj activation (exact add)
        y2 = y2 + x0_f32[L:L + TH, L:L + Wo, :].reshape(TH * Wo, C0)
    # Lane-dense store: last dim Wo*Cout (multiple of 128 for the real configs)
    # -> unmasked full-width vector stores instead of masked Cout-lane stores.
    o_ref[...] = y2.reshape(TH, Wo * y2.shape[-1]).astype(o_ref.dtype)


def _tile_vmem_bytes(th, Wo, C0, Ch, Cmid, Cout, L):
    hp, wp = th + 2 * L, Wo + 2 * L
    cmax = max(C0, Ch)
    return (2 * 4 * hp * wp * C0                  # double-buffered halo input (f32)
            + 2 * 4 * th * Wo * Cout              # double-buffered output block (f32)
            + 2 * 2 * hp * wp * Ch                # two live bf16 layer activations
            + 4 * hp * wp * Ch                    # f32 conv accumulator
            + 2 * 4 * hp * wp * cmax              # slice / relayout temporaries (slack)
            + 4 * th * Wo * (C0 + Cmid + Cout))   # crop0 + out_proj accumulators


def _pick_row_tile(Ho, Wo, C0, Ch, Cmid, Cout, L, budget, min_row_tiles=1):
    """Largest sublane-aligned row tile whose fused-tile VMEM estimate fits budget."""
    if Ho <= 8:
        return Ho
    cap = min(_round_up(Ho, 8), 256)
    cands = [th for th in range(8, cap + 1, 8)
             if _tile_vmem_bytes(th, Wo, C0, Ch, Cmid, Cout, L) <= budget]
    if not cands:
        cands = [8]                               # smallest aligned tile; never TH=1
    pref = [th for th in cands if -(-Ho // th) >= min_row_tiles]
    return max(pref) if pref else max(cands)


def hg_fused_forward(x0, params, *, identity):
    N, Ho, Wo, C0 = x0.shape
    L = len(params["layers"])
    Ch = params["layers"][0]["bias"].shape[0]
    Cmid = params["proj1"]["bias"].shape[0]
    Cout = params["proj2"]["bias"].shape[0]

    vmem_limit = _vmem_limit_bytes()

    # bf16 weights feed the MXU (~2x throughput, half the resident footprint);
    # BN scale/bias stay f32 for the VPU epilogue.
    wl = [lp["w"].astype(jnp.bfloat16) for lp in params["layers"]]
    w1 = params["proj1"]["w"].astype(jnp.bfloat16)
    w2 = params["proj2"]["w"].astype(jnp.bfloat16)
    weight_bytes = sum(int(w.size) * 2 for w in wl + [w1, w2])
    scale_bias_bytes = 4 * (2 * L * Ch + 2 * Cmid + 2 * Cout)
    # Row-tile budget = scoped limit minus double-buffered residents, with slack.
    budget = vmem_limit - 2 * (weight_bytes + scale_bias_bytes) - (4 << 20)

    # When N == 1 prefer splitting the row-tile axis across the two v7x
    # TensorCores (both axes "parallel", no cross-step prefetch); otherwise the
    # batch axis provides megacore parallelism and the row-tile axis is kept
    # "arbitrary" so the double-buffered halo prefetch is well defined.
    prefetch = N >= 2
    min_row_tiles = 1 if prefetch else 2
    TH = _pick_row_tile(Ho, Wo, C0, Ch, Cmid, Cout, L, budget, min_row_tiles)
    T = -(-Ho // TH)
    Hp = T * TH

    # Single pad of the (small) in_proj activation: zero padding for layer 1,
    # in-bounds halo windows for every row tile, and sublane-aligned (never
    # ragged, never TH=1) tiles even when TH does not divide Ho.
    x0_pad = jnp.pad(x0, ((0, 0), (L, Hp - Ho + L), (L, L), (0, 0)))

    args = [x0_pad]
    in_specs = [pl.BlockSpec(memory_space=pl.ANY)]
    for lp, w in zip(params["layers"], wl):
        args += [w, lp["scale"].reshape(1, -1), lp["bias"].reshape(1, -1)]
        in_specs += [
            pl.BlockSpec(w.shape, lambda n, t: (0, 0)),
            pl.BlockSpec((1, Ch), lambda n, t: (0, 0)),
            pl.BlockSpec((1, Ch), lambda n, t: (0, 0)),
        ]
    p1, p2 = params["proj1"], params["proj2"]
    args += [w1, p1["scale"].reshape(1, -1), p1["bias"].reshape(1, -1),
             w2, p2["scale"].reshape(1, -1), p2["bias"].reshape(1, -1)]
    in_specs += [
        pl.BlockSpec(w1.shape, lambda n, t: (0, 0)),
        pl.BlockSpec((1, Cmid), lambda n, t: (0, 0)),
        pl.BlockSpec((1, Cmid), lambda n, t: (0, 0)),
        pl.BlockSpec(w2.shape, lambda n, t: (0, 0)),
        pl.BlockSpec((1, Cout), lambda n, t: (0, 0)),
        pl.BlockSpec((1, Cout), lambda n, t: (0, 0)),
    ]

    kernel = functools.partial(
        _hg_fused_kernel, TH=TH, Ho=Ho, Wo=Wo, C0=C0, Ch=Ch, L=L,
        identity=identity, prefetch=prefetch)

    out = pl.pallas_call(
        kernel,
        out_shape=jax.ShapeDtypeStruct((N, Hp, Wo * Cout), jnp.float32),
        grid=(N, T),
        in_specs=in_specs,
        out_specs=pl.BlockSpec((None, TH, Wo * Cout), lambda n, t: (n, t, 0)),
        scratch_shapes=[
            pltpu.VMEM((2, TH + 2 * L, Wo + 2 * L, C0), jnp.float32),
            pltpu.SemaphoreType.DMA((2,)),
        ],
        compiler_params=pltpu.CompilerParams(
            dimension_semantics=("parallel", "arbitrary") if prefetch
            else ("parallel", "parallel"),
            vmem_limit_bytes=vmem_limit),
    )(*args)
    return out.reshape(N, Hp, Wo, Cout)[:, :Ho]


# ----------------------------------------------------------------------------
# Parameters (deterministic synthetic init, PyTorch layouts then converted)
# ----------------------------------------------------------------------------
def _fold_bn(gamma, beta, mean, var):
    scale = gamma / jnp.sqrt(var + EPS)
    return scale, beta - mean * scale


def _init_bn(key, c):
    k1, k2, k3, k4 = jax.random.split(key, 4)
    gamma = 1.0 + 0.1 * jax.random.normal(k1, (c,), jnp.float32)
    beta = 0.1 * jax.random.normal(k2, (c,), jnp.float32)
    mean = 0.1 * jax.random.normal(k3, (c,), jnp.float32)
    var = jax.random.uniform(k4, (c,), jnp.float32, 0.5, 1.5)
    return _fold_bn(gamma, beta, mean, var)


def _conv_init(key, shape, fan_in):
    # fan-in scaling keeps activations O(1) like a BN-normalized network
    return jax.random.normal(key, shape, jnp.float32) / jnp.sqrt(float(fan_in))


def init_params(key, in_ch, hidden_ch, out_ch, num_layers, stride):
    identity = (stride == 1) and (in_ch == out_ch)
    keys = jax.random.split(key, 2 * num_layers + 6)
    ki = iter(range(len(keys)))
    params = {}

    if not identity:
        # depthwise conv: torch weight (C, 1, s, s) -> (s*s, C)
        w = _conv_init(keys[next(ki)], (in_ch, 1, stride, stride), stride * stride)
        scale, bias = _init_bn(keys[next(ki)], in_ch)
        params["in_proj"] = {
            "w": w.transpose(2, 3, 1, 0).reshape(stride * stride, in_ch),
            "scale": scale, "bias": bias}

    layers, cin = [], in_ch
    for _ in range(num_layers):
        # torch weight (hidden, cin, 3, 3) -> (3, 3, cin, hidden) -> (9*cin, hidden)
        w = _conv_init(keys[next(ki)], (hidden_ch, cin, 3, 3), 9 * cin)
        scale, bias = _init_bn(keys[next(ki)], hidden_ch)
        layers.append({"w": w.transpose(2, 3, 1, 0).reshape(9 * cin, hidden_ch),
                       "scale": scale, "bias": bias})
        cin = hidden_ch
    params["layers"] = layers

    cat_ch = in_ch + hidden_ch * num_layers
    cmid = out_ch // 2
    w = _conv_init(keys[next(ki)], (cmid, cat_ch, 1, 1), cat_ch)
    s1, b1 = _init_bn(keys[next(ki)], cmid)
    params["proj1"] = {"w": w.reshape(cmid, cat_ch).T, "scale": s1, "bias": b1}
    w = _conv_init(keys[next(ki)], (out_ch, cmid, 1, 1), cmid)
    s2, b2 = _init_bn(keys[next(ki)], out_ch)
    params["proj2"] = {"w": w.reshape(out_ch, cmid).T, "scale": s2, "bias": b2}
    return params


# ----------------------------------------------------------------------------
# Forward pass (glue: layout transposes, space-to-depth, single halo pad)
# ----------------------------------------------------------------------------
def hgblock_forward(x_nchw, params, *, stride):
    N, Cin, H, W = x_nchw.shape
    Cout = params["proj2"]["bias"].shape[0]
    identity = (stride == 1) and (Cin == Cout)
    x = jnp.transpose(x_nchw, (0, 2, 3, 1)).astype(jnp.float32)   # NCHW -> NHWC
    if identity:
        x0 = x
    else:
        ip = params["in_proj"]
        x0 = in_proj_forward(x, ip["w"], ip["scale"], ip["bias"], stride)
    out = hg_fused_forward(x0, params, identity=identity)
    return jnp.transpose(out, (0, 3, 1, 2))                        # NHWC -> NCHW


# ----------------------------------------------------------------------------
# Pure-JAX reference (for a self-check only; f32 matmuls)
# ----------------------------------------------------------------------------
def hgblock_reference(x_nchw, params, *, stride):
    x = jnp.transpose(x_nchw, (0, 2, 3, 1)).astype(jnp.float32)
    Cin = x.shape[-1]
    Cout = params["proj2"]["bias"].shape[0]
    identity = (stride == 1) and (Cin == Cout)
    hp = jax.lax.Precision.HIGHEST

    def conv(v, w, strides=(1, 1), padding="VALID", groups=1):
        return jax.lax.conv_general_dilated(
            v, w, window_strides=strides, padding=padding,
            dimension_numbers=("NHWC", "HWIO", "NHWC"),
            feature_group_count=groups, precision=hp)

    if identity:
        x0 = x
    else:
        ip = params["in_proj"]
        wd = ip["w"].reshape(stride, stride, 1, Cin)
        x0 = conv(x, wd, strides=(stride, stride), groups=Cin) * ip["scale"] + ip["bias"]
    feats, cur, cin = [x0], x0, Cin
    hidden = params["layers"][0]["bias"].shape[0]
    for lp in params["layers"]:
        w3 = lp["w"].reshape(3, 3, cin, hidden)
        cur = jnp.maximum(conv(cur, w3, padding=((1, 1), (1, 1))) * lp["scale"]
                          + lp["bias"], 0.0)
        feats.append(cur)
        cin = hidden
    cat = jnp.concatenate(feats, axis=-1)
    p1, p2 = params["proj1"], params["proj2"]
    y = jnp.maximum(conv(cat, p1["w"].reshape(1, 1, *p1["w"].shape)) * p1["scale"]
                    + p1["bias"], 0.0)
    y = jnp.maximum(conv(y, p2["w"].reshape(1, 1, *p2["w"].shape)) * p2["scale"]
                    + p2["bias"], 0.0)
    if identity:
        y = y + x0
    return jnp.transpose(y, (0, 3, 1, 2))


# ----------------------------------------------------------------------------
if __name__ == "__main__":
    key = jax.random.PRNGKey(0)
    kx1, kp1, kx2, kp2 = jax.random.split(key, 4)

    # Kernel uses bf16 MXU operands with f32 accumulation; reference is full f32,
    # so the comparison tolerance is sized for bf16 rounding (rel ~2^-8 per matmul).
    TOL = 4e-2

    # Config 1: downsampling block (stride=2 -> depthwise in_proj path).
    N, IN_CH, H, W = 2, 32, 16, 16
    HIDDEN, OUT_CH, NUM_LAYERS, STRIDE = 32, 64, 3, 2
    x = jax.random.normal(kx1, (N, IN_CH, H, W), jnp.float32)
    params = init_params(kp1, IN_CH, HIDDEN, OUT_CH, NUM_LAYERS, STRIDE)
    out = jax.block_until_ready(hgblock_forward(x, params, stride=STRIDE))
    assert out.shape == (N, OUT_CH, H // STRIDE, W // STRIDE), out.shape
    assert bool(jnp.all(jnp.isfinite(out)))
    ref = hgblock_reference(x, params, stride=STRIDE)
    err = float(jnp.max(jnp.abs(out - ref)))
    assert err < TOL, f"mismatch vs reference: {err}"

    # Config 2: identity / residual path (stride=1, in_ch == out_ch).
    x2 = jax.random.normal(kx2, (2, 64, 8, 8), jnp.float32)
    params2 = init_params(kp2, 64, 32, 64, 2, 1)
    out2 = jax.block_until_ready(hgblock_forward(x2, params2, stride=1))
    assert out2.shape == (2, 64, 8, 8), out2.shape
    assert bool(jnp.all(jnp.isfinite(out2)))
    ref2 = hgblock_reference(x2, params2, stride=1)
    err2 = float(jnp.max(jnp.abs(out2 - ref2)))
    assert err2 < TOL, f"mismatch vs reference (identity): {err2}"

    print("KERNEL_OK")
</pallas_src>

<mosaic_0001>
module attributes {stable_mosaic.version = 11 : i64} {
  func.func @_in_proj_kernel(%arg0: i32, %arg1: memref<128x128xf32, #tpu.memory_space<vmem>>, %arg2: memref<1x128xf32, #tpu.memory_space<vmem>>, %arg3: memref<1x32xf32, #tpu.memory_space<vmem>>, %arg4: memref<1x32xf32, #tpu.memory_space<vmem>>, %arg5: memref<128x32xf32, #tpu.memory_space<vmem>>) attributes {dimension_semantics = [#tpu.dimension_semantics<parallel>], iteration_bounds = array<i64: 1>, scalar_prefetch = 0 : i64, scratch_operands = 0 : i64, tpu.core_type = #tpu.core_type<tc>, window_params = [{transform_indices = @transform_0, window_bounds = array<i64: 128, 128>}, {pipeline_mode = #tpu.pipeline_mode<synchronous>, transform_indices = @transform_1, window_bounds = array<i64: 1, 128>}, {pipeline_mode = #tpu.pipeline_mode<synchronous>, transform_indices = @transform_2, window_bounds = array<i64: 1, 32>}, {pipeline_mode = #tpu.pipeline_mode<synchronous>, transform_indices = @transform_3, window_bounds = array<i64: 1, 32>}, {transform_indices = @transform_4, window_bounds = array<i64: 128, 32>}]} {
    %c0 = arith.constant 0 : index
    %c0_0 = arith.constant 0 : index
    %0 = vector.load %arg1[%c0, %c0_0] : memref<128x128xf32, #tpu.memory_space<vmem>>, vector<128x128xf32>
    %c0_1 = arith.constant 0 : index
    %c0_2 = arith.constant 0 : index
    %1 = vector.load %arg2[%c0_1, %c0_2] : memref<1x128xf32, #tpu.memory_space<vmem>>, vector<1x128xf32>
    %2 = vector.broadcast %1 : vector<1x128xf32> to vector<128x128xf32>
    %3 = arith.mulf %0, %2 : vector<128x128xf32>
    %4 = vector.extract_strided_slice %3 {offsets = [0, 0], sizes = [128, 32], strides = [1, 1]} : vector<128x128xf32> to vector<128x32xf32>
    %5 = vector.extract_strided_slice %3 {offsets = [0, 32], sizes = [128, 32], strides = [1, 1]} : vector<128x128xf32> to vector<128x32xf32>
    %6 = arith.addf %4, %5 : vector<128x32xf32>
    %7 = vector.extract_strided_slice %3 {offsets = [0, 64], sizes = [128, 32], strides = [1, 1]} : vector<128x128xf32> to vector<128x32xf32>
    %8 = arith.addf %6, %7 : vector<128x32xf32>
    %9 = vector.extract_strided_slice %3 {offsets = [0, 96], sizes = [128, 32], strides = [1, 1]} : vector<128x128xf32> to vector<128x32xf32>
    %10 = arith.addf %8, %9 : vector<128x32xf32>
    %c0_3 = arith.constant 0 : index
    %c0_4 = arith.constant 0 : index
    %11 = vector.load %arg3[%c0_3, %c0_4] : memref<1x32xf32, #tpu.memory_space<vmem>>, vector<1x32xf32>
    %12 = vector.broadcast %11 : vector<1x32xf32> to vector<128x32xf32>
    %13 = arith.mulf %10, %12 : vector<128x32xf32>
    %c0_5 = arith.constant 0 : index
    %c0_6 = arith.constant 0 : index
    %14 = vector.load %arg4[%c0_5, %c0_6] : memref<1x32xf32, #tpu.memory_space<vmem>>, vector<1x32xf32>
    %15 = vector.broadcast %14 : vector<1x32xf32> to vector<128x32xf32>
    %16 = arith.addf %13, %15 : vector<128x32xf32>
    %c0_7 = arith.constant 0 : index
    %c0_8 = arith.constant 0 : index
    %17 = vector.load %arg5[%c0_7, %c0_8] : memref<128x32xf32, #tpu.memory_space<vmem>>, vector<128x32xf32>
    tpu.vector_store %arg5[%c0_7, %c0_8], %16 {strides = array<i32>} : memref<128x32xf32, #tpu.memory_space<vmem>>, vector<128x32xf32>,
    return
  }
  func.func @transform_0(%arg0: i32) -> (i32, i32) {
    %c0_i32 = arith.constant 0 : i32
    %c0_i32_0 = arith.constant 0 : i32
    return %arg0, %c0_i32 : i32, i32
  }
  func.func @transform_1(%arg0: i32) -> (i32, i32) {
    %c0_i32 = arith.constant 0 : i32
    %c0_i32_0 = arith.constant 0 : i32
    %c0_i32_1 = arith.constant 0 : i32
    return %c0_i32, %c0_i32_0 : i32, i32
  }
  func.func @transform_2(%arg0: i32) -> (i32, i32) {
    %c0_i32 = arith.constant 0 : i32
    %c0_i32_0 = arith.constant 0 : i32
    %c0_i32_1 = arith.constant 0 : i32
    return %c0_i32, %c0_i32_0 : i32, i32
  }
  func.func @transform_3(%arg0: i32) -> (i32, i32) {
    %c0_i32 = arith.constant 0 : i32
    %c0_i32_0 = arith.constant 0 : i32
    %c0_i32_1 = arith.constant 0 : i32
    return %c0_i32, %c0_i32_0 : i32, i32
  }
  func.func @transform_4(%arg0: i32) -> (i32, i32) {
    %c0_i32 = arith.constant 0 : i32
    %c0_i32_0 = arith.constant 0 : i32
    return %arg0, %c0_i32 : i32, i32
  }
}

</mosaic_0001>

<bundles_post_ra>
// kernel: tpu_custom_call.1
= control target key start
LH: loop header
LB: loop body
LE: loop exit
PB: predicated region body
PF: predicated region fallthrough
CT: control target
= control target key end

     0   :  { %9 = vsyncpa [#allocation3], 0  ;;  %s377_s15 = smov [#allocation2]   ;;  %s674_s0 = inlined_call_operand.hbm [shape: f32[128,128], index: 0, kind: input, shape index: {}]   ;;  %s675_s1 = inlined_call_operand.vmem [shape: f32[1,128], index: 1, kind: input, shape index: {}]   ;;  %s676_s2 = inlined_call_operand.vmem [shape: f32[1,32], index: 2, kind: input, shape index: {}]   ;;  %s677_s3 = inlined_call_operand.vmem [shape: f32[1,32], index: 3, kind: input, shape index: {}]   ;;  %s678_s4 = inlined_call_operand.vmem [shape: f32[128,32], index: 4, kind: output, shape index: {}]  }
   0x1   :  { %s15_s16 = sshll.u32 %s377_s15, 4  ;;  %s16_s16 = int_to_ptr.vmem [resolvable:$true] %s15_s16 }
   0x2   :  { %s363_s17 = scalar_lea.vmem %s16_s16, 2048  ;;  %p368_p1 = scmp.lt.s32.totalorder %s16_s16, %s16_s16 }
   0x3   :  { %p364_p0 = scmp.ne.s32.totalorder %s16_s16, %s363_s17  ;;  %p369_p2 = scmp.lt.s32.totalorder %s363_s17, %s363_s17 }
   0x5   :  { %p370_p3 = por %p369_p2, %p368_p1 }
   0x7   :  { %p371_p4 = pnand %p370_p3, %p364_p0 }
   0x9   :  { %374 = shalt.err (!%p371_p4)
}
   0xa   :  { %s378_s18 = smov 128   ;;  %s379_s19 = smov 8  }
   0xb   :  { %21 = dma.hbm_to_vmem [thread:$0]  %s674_s0, 2048, %s16_s16, [#allocation3], %s378_s18, %s378_s18, %s379_s19  }
   0xc   :  { %375 = dma.done.wait [#allocation3], 2048  }
   0xd   :  { %376 = vsyncadd [#allocation3], 4294965248  ;;  %v33_v0 = vld [vmem:[#allocation2 + $0x10] sm:$0xff]  ;;  %v346_v1 = vld [vmem:[%s675_s1] ss:$0 sm:$0xff]  ;;  %s380_s24 = smov 96  }
   0xe   :  { %v31_v2 = vld [vmem:[#allocation2] sm:$0xff]  ;;  %v414_v3 = vmul.f32 %v346_v1, %v33_v0  ;;  %v34_v5 = vld [vmem:[#allocation2 + $0x18] sm:$0xff]  ;;  %v32_v6 = vld [vmem:[#allocation2 + $0x8] sm:$0xff]  ;;  %s381_s0 = smov 64   ;;  %s382_s1 = smov 32   ;;  %vm324_vm0 = vcmask 261120  }
   0xf   :  { %v416_v4 = vmul.f32 %v346_v1, %v31_v2  ;;  %v422_v7 = vmul.f32 %v346_v1, %v34_v5  ;;  %v424_v8 = vmul.f32 %v346_v1, %v32_v6  ;;  %v36_v9 = vld [vmem:[#allocation2 + $0x28] sm:$0xff]  ;;  %v35_v10 = vld [vmem:[#allocation2 + $0x20] sm:$0xff]  ;;  %v38_v13 = vld [vmem:[#allocation2 + $0x38] sm:$0xff] }
  0x10   :  { %90 = vrot.lane.b32.xlu1 %v414_v3, %s380_s24  ;;  %v430_v11 = vmul.f32 %v346_v1, %v36_v9  ;;  %v432_v12 = vmul.f32 %v346_v1, %v35_v10  ;;  %v37_v14 = vld [vmem:[#allocation2 + $0x30] sm:$0xff]  ;;  %v438_v15 = vmul.f32 %v346_v1, %v38_v13  ;;  %v40_v17 = vld [vmem:[#allocation2 + $0x48] sm:$0xff]  ;;  %v39_v18 = vld [vmem:[#allocation2 + $0x40] sm:$0xff] }
  0x11   :  { %86 = vrot.lane.b32.xlu0 %v416_v4, %s380_s24  ;;  %v440_v16 = vmul.f32 %v346_v1, %v37_v14  ;;  %v446_v19 = vmul.f32 %v346_v1, %v40_v17  ;;  %v448_v20 = vmul.f32 %v346_v1, %v39_v18  ;;  %v42_v21 = vld [vmem:[#allocation2 + $0x58] sm:$0xff]  ;;  %v41_v22 = vld [vmem:[#allocation2 + $0x50] sm:$0xff]  ;;  %v44_v25 = vld [vmem:[#allocation2 + $0x68] sm:$0xff] }
  0x12   :  { %v454_v23 = vmul.f32 %v346_v1, %v42_v21  ;;  %v456_v24 = vmul.f32 %v346_v1, %v41_v22  ;;  %v43_v26 = vld [vmem:[#allocation2 + $0x60] sm:$0xff]  ;;  %v462_v27 = vmul.f32 %v346_v1, %v44_v25  ;;  %v46_v29 = vld [vmem:[#allocation2 + $0x78] sm:$0xff]  ;;  %v45_v30 = vld [vmem:[#allocation2 + $0x70] sm:$0xff] }
  0x13   :  { %v464_v28 = vmul.f32 %v346_v1, %v43_v26  ;;  %v470_v31 = vmul.f32 %v346_v1, %v46_v29  ;;  %v472_v32 = vmul.f32 %v346_v1, %v45_v30  ;;  %v543_v9 = vld [vmem:[%s676_s2] ss:$0 sm:$0xff] }
  0x14   :  { %92 = vrot.lane.b32.xlu1 %v422_v7, %s380_s24 }
  0x15   :  { %88 = vrot.lane.b32.xlu0 %v424_v8, %s380_s24 }
  0x18   :  { %96 = vrot.lane.b32.xlu1 %v430_v11, %s380_s24 }
  0x19   :  { %94 = vrot.lane.b32.xlu0 %v432_v12, %s380_s24 }
  0x1c   :  { %100 = vrot.lane.b32.xlu1 %v438_v15, %s380_s24 }
  0x1d   :  { %98 = vrot.lane.b32.xlu0 %v440_v16, %s380_s24 }
  0x20   :  { %104 = vrot.lane.b32.xlu1 %v446_v19, %s380_s24 }
  0x21   :  { %102 = vrot.lane.b32.xlu0 %v448_v20, %s380_s24 }
  0x24   :  { %108 = vrot.lane.b32.xlu1 %v454_v23, %s380_s24 }
  0x25   :  { %106 = vrot.lane.b32.xlu0 %v456_v24, %s380_s24 }
  0x28   :  { %112 = vrot.lane.b32.xlu1 %v462_v27, %s380_s24 }
  0x29   :  { %110 = vrot.lane.b32.xlu0 %v464_v28, %s380_s24 }
  0x2c   :  { %116 = vrot.lane.b32.xlu1 %v470_v31, %s380_s24 }
  0x2d   :  { %114 = vrot.lane.b32.xlu0 %v472_v32, %s380_s24 }
  0x30   :  { %152 = vrot.lane.b32.xlu1 %v424_v8, %s381_s0 }
  0x31   :  { %150 = vrot.lane.b32.xlu0 %v416_v4, %s381_s0 }
  0x34   :  { %156 = vrot.lane.b32.xlu1 %v422_v7, %s381_s0 }
  0x35   :  { %154 = vrot.lane.b32.xlu0 %v414_v3, %s381_s0 }
  0x38   :  { %160 = vrot.lane.b32.xlu1 %v430_v11, %s381_s0 }
  0x39   :  { %158 = vrot.lane.b32.xlu0 %v432_v12, %s381_s0 }
  0x3c   :  { %164 = vrot.lane.b32.xlu1 %v438_v15, %s381_s0 }
  0x3d   :  { %162 = vrot.lane.b32.xlu0 %v440_v16, %s381_s0 }
  0x40   :  { %168 = vrot.lane.b32.xlu1 %v446_v19, %s381_s0 }
  0x41   :  { %166 = vrot.lane.b32.xlu0 %v448_v20, %s381_s0 }
  0x44   :  { %172 = vrot.lane.b32.xlu1 %v454_v23, %s381_s0 }
  0x45   :  { %170 = vrot.lane.b32.xlu0 %v456_v24, %s381_s0 }
  0x48   :  { %176 = vrot.lane.b32.xlu1 %v462_v27, %s381_s0 }
  0x49   :  { %174 = vrot.lane.b32.xlu0 %v464_v28, %s381_s0 }
  0x4c   :  { %180 = vrot.lane.b32.xlu1 %v470_v31, %s381_s0 }
  0x4d   :  { %178 = vrot.lane.b32.xlu0 %v472_v32, %s381_s0 }
  0x50   :  { %216 = vrot.lane.b32.xlu1 %v424_v8, %s382_s1 }
  0x51   :  { %214 = vrot.lane.b32.xlu0 %v416_v4, %s382_s1 }
  0x54   :  { %220 = vrot.lane.b32.xlu1 %v422_v7, %s382_s1 }
  0x55   :  { %218 = vrot.lane.b32.xlu0 %v414_v3, %s382_s1 }
  0x58   :  { %224 = vrot.lane.b32.xlu1 %v430_v11, %s382_s1 }
  0x59   :  { %222 = vrot.lane.b32.xlu0 %v432_v12, %s382_s1 }
  0x5c   :  { %228 = vrot.lane.b32.xlu1 %v438_v15, %s382_s1 }
  0x5d   :  { %226 = vrot.lane.b32.xlu0 %v440_v16, %s382_s1 }
  0x60   :  { %232 = vrot.lane.b32.xlu1 %v446_v19, %s382_s1 }
  0x61   :  { %230 = vrot.lane.b32.xlu0 %v448_v20, %s382_s1 }
  0x64   :  { %236 = vrot.lane.b32.xlu1 %v454_v23, %s382_s1 }
  0x65   :  { %234 = vrot.lane.b32.xlu0 %v456_v24, %s382_s1 }
  0x68   :  { %240 = vrot.lane.b32.xlu1 %v462_v27, %s382_s1 }
  0x69   :  { %238 = vrot.lane.b32.xlu0 %v464_v28, %s382_s1 }
  0x6c   :  { %244 = vrot.lane.b32.xlu1 %v470_v31, %s382_s1 }
  0x6d   :  { %242 = vrot.lane.b32.xlu0 %v472_v32, %s382_s1 }
  0x82   :  { %v91_v33 = vpop.permute.xlu1 %90 }
  0x83   :  { %v87_v34 = vpop.permute.xlu0 %86  ;;  %v136_v14 = vadd.f32 %v91_v33, %v414_v3 }
  0x84   :  { %v134_v1 = vadd.f32 %v87_v34, %v416_v4  ;;  %v550_v4 = vld [vmem:[%s677_s3] ss:$0 sm:$0xff] }
  0x86   :  { %v93_v35 = vpop.permute.xlu1 %92 }
  0x87   :  { %v89_v36 = vpop.permute.xlu0 %88  ;;  %v137_v17 = vadd.f32 %v93_v35, %v422_v7 }
  0x88   :  { %v135_v2 = vadd.f32 %v89_v36, %v424_v8 }
  0x8a   :  { %v97_v37 = vpop.permute.xlu1 %96 }
  0x8b   :  { %v95_v38 = vpop.permute.xlu0 %94  ;;  %v139_v29 = vadd.f32 %v97_v37, %v430_v11 }
  0x8c   :  { %v138_v30 = vadd.f32 %v95_v38, %v432_v12 }
  0x8e   :  { %v101_v39 = vpop.permute.xlu1 %100 }
  0x8f   :  { %v99_v40 = vpop.permute.xlu0 %98  ;;  %v141_v37 = vadd.f32 %v101_v39, %v438_v15 }
  0x90   :  { %v140_v38 = vadd.f32 %v99_v40, %v440_v16 }
  0x92   :  { %v510_v41 = vpop.permute.xlu1 %104 }
  0x93   :  { %v512_v42 = vpop.permute.xlu0 %102  ;;  %v143_v39 = vadd.f32 %v510_v41, %v446_v19 }
  0x94   :  { %v142_v40 = vadd.f32 %v512_v42, %v448_v20 }
  0x96   :  { %v514_v43 = vpop.permute.xlu1 %108 }
  0x97   :  { %v516_v44 = vpop.permute.xlu0 %106  ;;  %v145_v41 = vadd.f32 %v514_v43, %v454_v23 }
  0x98   :  { %v144_v42 = vadd.f32 %v516_v44, %v456_v24 }
  0x9a   :  { %v518_v45 = vpop.permute.xlu1 %112 }
  0x9b   :  { %v520_v46 = vpop.permute.xlu0 %110  ;;  %v147_v43 = vadd.f32 %v518_v45, %v462_v27 }
  0x9c   :  { %v146_v44 = vadd.f32 %v520_v46, %v464_v28 }
  0x9e   :  { %v522_v47 = vpop.permute.xlu1 %116 }
  0x9f   :  { %v524_v48 = vpop.permute.xlu0 %114  ;;  %v149_v45 = vadd.f32 %v522_v47, %v470_v31 }
  0xa0   :  { %v148_v46 = vadd.f32 %v524_v48, %v472_v32 }
  0xa2   :  { %v153_v49 = vpop.permute.xlu1 %152 }
  0xa3   :  { %v151_v50 = vpop.permute.xlu0 %150  ;;  %v199_v5 = vadd.f32 %v153_v49, %v135_v2 }
  0xa4   :  { %v198_v6 = vadd.f32 %v151_v50, %v134_v1 }
  0xa6   :  { %v157_v51 = vpop.permute.xlu1 %156 }
  0xa7   :  { %v155_v52 = vpop.permute.xlu0 %154  ;;  %v201_v8 = vadd.f32 %v157_v51, %v137_v17 }
  0xa8   :  { %v200_v22 = vadd.f32 %v155_v52, %v136_v14 }
  0xaa   :  { %v161_v53 = vpop.permute.xlu1 %160 }
  0xab   :  { %v159_v54 = vpop.permute.xlu0 %158  ;;  %v203_v49 = vadd.f32 %v161_v53, %v139_v29 }
  0xac   :  { %v202_v50 = vadd.f32 %v159_v54, %v138_v30 }
  0xae   :  { %v165_v55 = vpop.permute.xlu1 %164 }
  0xaf   :  { %v163_v56 = vpop.permute.xlu0 %162 }
  0xb2   :  { %v169_v57 = vpop.permute.xlu1 %168 }
  0xb3   :  { %v167_v58 = vpop.permute.xlu0 %166 }
  0xb6   :  { %v526_v59 = vpop.permute.xlu1 %172 }
  0xb7   :  { %v528_v60 = vpop.permute.xlu0 %170  ;;  %v209_v29 = vadd.f32 %v526_v59, %v145_v41 }
  0xb8   :  { %v208_v30 = vadd.f32 %v528_v60, %v144_v42 }
  0xba   :  { %v530_v61 = vpop.permute.xlu1 %176 }
  0xbb   :  { %v532_v62 = vpop.permute.xlu0 %174 }
  0xbe   :  { %v534_v63 = vpop.permute.xlu1 %180 }
  0xbf   :  { %v536_v0 = vpop.permute.xlu0 %178 }
  0xc2   :  { %v217_v10 = vpop.permute.xlu1 %216 }
  0xc3   :  { %v215_v13 = vpop.permute.xlu0 %214  ;;  %v263_v18 = vadd.f32 %v217_v10, %v199_v5  ;;  %v205_v5 = vadd.f32 %v165_v55, %v141_v37  ;;  %v213_v37 = vadd.f32 %v534_v63, %v149_v45 }
  0xc4   :  { %v262_v21 = vadd.f32 %v215_v13, %v198_v6  ;;  %v204_v6 = vadd.f32 %v163_v56, %v140_v38  ;;  %v212_v38 = vadd.f32 %v536_v0, %v148_v46 }
  0xc5   :  { %v286_v25 = vmul.f32 %v543_v9, %v263_v18  ;;  %v207_v18 = vadd.f32 %v169_v57, %v143_v39 }
  0xc6   :  { %v285_v26 = vmul.f32 %v543_v9, %v262_v21  ;;  %v221_v3 = vpop.permute.xlu1 %220  ;;  %v206_v21 = vadd.f32 %v167_v58, %v142_v40 }
  0xc7   :  { %v219_v7 = vpop.permute.xlu0 %218  ;;  %v309_v33 = vadd.f32 %v550_v4, %v286_v25  ;;  %v265_v35 = vadd.f32 %v221_v3, %v201_v8 }
  0xc8   :  { %v308_v34 = vadd.f32 %v550_v4, %v285_v26  ;;  %v264_v36 = vadd.f32 %v219_v7, %v200_v22 }
  0xc9   :  { %326 = vst.msk [vmem:[%s678_s4 + $0x8] sm:$0xff] %vm324_vm0, %v309_v33  ;;  %v288_v11 = vmul.f32 %v543_v9, %v265_v35  ;;  %v211_v35 = vadd.f32 %v530_v61, %v147_v43 }
  0xca   :  { %325 = vst.msk [vmem:[%s678_s4] sm:$0xff] %vm324_vm0, %v308_v34  ;;  %v287_v12 = vmul.f32 %v543_v9, %v264_v36  ;;  %v225_v51 = vpop.permute.xlu1 %224  ;;  %v210_v36 = vadd.f32 %v532_v62, %v146_v44 }
  0xcb   :  { %v223_v52 = vpop.permute.xlu0 %222  ;;  %v311_v53 = vadd.f32 %v550_v4, %v288_v11  ;;  %v267_v1 = vadd.f32 %v225_v51, %v203_v49 }
  0xcc   :  { %v310_v54 = vadd.f32 %v550_v4, %v287_v12  ;;  %v266_v2 = vadd.f32 %v223_v52, %v202_v50 }
  0xcd   :  { %328 = vst.msk [vmem:[%s678_s4 + $0x18] sm:$0xff] %vm324_vm0, %v311_v53  ;;  %v290_v15 = vmul.f32 %v543_v9, %v267_v1 }
  0xce   :  { %327 = vst.msk [vmem:[%s678_s4 + $0x10] sm:$0xff] %vm324_vm0, %v310_v54  ;;  %v289_v16 = vmul.f32 %v543_v9, %v266_v2  ;;  %v229_v55 = vpop.permute.xlu1 %228 }
  0xcf   :  { %v227_v56 = vpop.permute.xlu0 %226  ;;  %v313_v10 = vadd.f32 %v550_v4, %v290_v15  ;;  %v269_v14 = vadd.f32 %v229_v55, %v205_v5 }
  0xd0   :  { %v312_v13 = vadd.f32 %v550_v4, %v289_v16  ;;  %v268_v17 = vadd.f32 %v227_v56, %v204_v6 }
  0xd1   :  { %330 = vst.msk [vmem:[%s678_s4 + $0x28] sm:$0xff] %vm324_vm0, %v313_v10  ;;  %v292_v19 = vmul.f32 %v543_v9, %v269_v14 }
  0xd2   :  { %329 = vst.msk [vmem:[%s678_s4 + $0x20] sm:$0xff] %vm324_vm0, %v312_v13  ;;  %v291_v20 = vmul.f32 %v543_v9, %v268_v17  ;;  %v233_v57 = vpop.permute.xlu1 %232 }
  0xd3   :  { %v231_v58 = vpop.permute.xlu0 %230  ;;  %v315_v8 = vadd.f32 %v550_v4, %v292_v19  ;;  %v271_v25 = vadd.f32 %v233_v57, %v207_v18 }
  0xd4   :  { %v314_v22 = vadd.f32 %v550_v4, %v291_v20  ;;  %v270_v26 = vadd.f32 %v231_v58, %v206_v21 }
  0xd5   :  { %332 = vst.msk [vmem:[%s678_s4 + $0x38] sm:$0xff] %vm324_vm0, %v315_v8  ;;  %v294_v23 = vmul.f32 %v543_v9, %v271_v25 }
  0xd6   :  { %331 = vst.msk [vmem:[%s678_s4 + $0x30] sm:$0xff] %vm324_vm0, %v314_v22  ;;  %v293_v24 = vmul.f32 %v543_v9, %v270_v26  ;;  %v237_v59 = vpop.permute.xlu1 %236 }
  0xd7   :  { %v235_v60 = vpop.permute.xlu0 %234  ;;  %v317_v3 = vadd.f32 %v550_v4, %v294_v23  ;;  %v273_v33 = vadd.f32 %v237_v59, %v209_v29 }
  0xd8   :  { %v316_v7 = vadd.f32 %v550_v4, %v293_v24  ;;  %v272_v34 = vadd.f32 %v235_v60, %v208_v30 }
  0xd9   :  { %334 = vst.msk [vmem:[%s678_s4 + $0x48] sm:$0xff] %vm324_vm0, %v317_v3  ;;  %v296_v27 = vmul.f32 %v543_v9, %v273_v33 }
  0xda   :  { %333 = vst.msk [vmem:[%s678_s4 + $0x40] sm:$0xff] %vm324_vm0, %v316_v7  ;;  %v295_v28 = vmul.f32 %v543_v9, %v272_v34  ;;  %v241_v61 = vpop.permute.xlu1 %240 }
  0xdb   :  { %v239_v62 = vpop.permute.xlu0 %238  ;;  %v319_v49 = vadd.f32 %v550_v4, %v296_v27  ;;  %v275_v11 = vadd.f32 %v241_v61, %v211_v35 }
  0xdc   :  { %v318_v50 = vadd.f32 %v550_v4, %v295_v28  ;;  %v274_v12 = vadd.f32 %v239_v62, %v210_v36 }
  0xdd   :  { %336 = vst.msk [vmem:[%s678_s4 + $0x58] sm:$0xff] %vm324_vm0, %v319_v49  ;;  %v298_v31 = vmul.f32 %v543_v9, %v275_v11 }
  0xde   :  { %335 = vst.msk [vmem:[%s678_s4 + $0x50] sm:$0xff] %vm324_vm0, %v318_v50  ;;  %v297_v32 = vmul.f32 %v543_v9, %v274_v12  ;;  %v245_v47 = vpop.permute.xlu1 %244 }
  0xdf   :  { %v243_v48 = vpop.permute.xlu0 %242  ;;  %v321_v63 = vadd.f32 %v550_v4, %v298_v31  ;;  %v277_v51 = vadd.f32 %v245_v47, %v213_v37 }
  0xe0   :  { %v320_v0 = vadd.f32 %v550_v4, %v297_v32  ;;  %v276_v52 = vadd.f32 %v243_v48, %v212_v38 }
  0xe1   :  { %338 = vst.msk [vmem:[%s678_s4 + $0x68] sm:$0xff] %vm324_vm0, %v321_v63  ;;  %v300_v53 = vmul.f32 %v543_v9, %v277_v51 }
  0xe2   :  { %337 = vst.msk [vmem:[%s678_s4 + $0x60] sm:$0xff] %vm324_vm0, %v320_v0  ;;  %v299_v54 = vmul.f32 %v543_v9, %v276_v52 }
  0xe3   :  { %v323_v1 = vadd.f32 %v550_v4, %v300_v53 }
  0xe4   :  { %v322_v2 = vadd.f32 %v550_v4, %v299_v54 }
  0xe5   :  { %340 = vst.msk [vmem:[%s678_s4 + $0x78] sm:$0xff] %vm324_vm0, %v323_v1 }
  0xe6   :  { %339 = vst.msk [vmem:[%s678_s4 + $0x70] sm:$0xff] %vm324_vm0, %v322_v2 }
  0xe7   :  { %345 = vsyncpa [#allocation3], 1 }

</bundles_post_ra>
